<compile_context>
chip_gen: v5e
topology: v5e:2x2
jax: 0.10.0
libtpu: 0.0.40
codegen_flags: <defaults>
</compile_context>

<pallas_src>
import math

import jax
import jax.numpy as jnp
import numpy as np
from jax.experimental import pallas as pl
from jax.experimental.pallas import tpu as pltpu


# ------------------------------ kernels -------------------------------------


def _pool_kernel(x_ref, pm_ref, out_ref):
    # x_ref: (Ct, HW), pm_ref: (HW, P), out_ref: (Ct, P)
    out_ref[...] = jnp.dot(
        x_ref[...], pm_ref[...], preferred_element_type=jnp.float32
    ).astype(out_ref.dtype)


def _fc_kernel(flat_ref, w1_ref, b1_ref, w2_ref, b2_ref, out_ref, acc_ref):
    # grid axis 0 = contraction (K) tiles of the big fc matmul.
    k = pl.program_id(0)

    @pl.when(k == 0)
    def _():
        acc_ref[...] = jnp.zeros_like(acc_ref)

    # flat: (N, tk), w1: (hidden, tk)  -> contract on tk -> (N, hidden).
    # Contracting on the LAST axis of both operands keeps the fc weight in its
    # native PyTorch layout (no transposed HBM copy on the wrapper side).
    acc_ref[...] += jax.lax.dot_general(
        flat_ref[...],
        w1_ref[...],
        dimension_numbers=(((1,), (1,)), ((), ())),
        preferred_element_type=jnp.float32,
    )

    @pl.when(k == pl.num_programs(0) - 1)
    def _():
        y1 = jnp.maximum(acc_ref[...] + b1_ref[...], 0.0)            # fc + ReLU
        # y1: (N, hidden), w2: (hidden_out, hidden_in) -> contract on "in".
        y2 = jax.lax.dot_general(
            y1,
            w2_ref[...],
            dimension_numbers=(((1,), (1,)), ((), ())),
            preferred_element_type=jnp.float32,
        )
        out_ref[...] = jnp.maximum(y2 + b2_ref[...], 0.0).astype(out_ref.dtype)


def _broadcast_kernel(y_ref, out_ref):
    # y_ref: (hidden, 1), out_ref: (hidden, HWo).  Bilinear upsample of a 1x1
    # map with align_corners=True is a constant broadcast along the lane axis.
    out_ref[...] = jnp.broadcast_to(y_ref[...], out_ref.shape).astype(out_ref.dtype)


# ------------------------------ wrapper --------------------------------------


def _make_pool_matrix(H, W, k):
    """(H*W, h_*w_) matrix M with M[s, p] = 1/|window p| if pixel s lies in
    pooling window p; matches AvgPool2d(k, stride=k, ceil_mode=True, padding=0)
    (partial edge windows divide by their clipped size)."""
    h_ = math.ceil(H / k)
    w_ = math.ceil(W / k)
    m = np.zeros((H * W, h_ * w_), dtype=np.float32)
    for i in range(H):
        for j in range(W):
            pi, pj = i // k, j // k
            cnt = (min((pi + 1) * k, H) - pi * k) * (min((pj + 1) * k, W) - pj * k)
            m[i * W + j, pi * w_ + pj] = 1.0 / cnt
    return jnp.asarray(m)


def _largest_divisor(n, candidates):
    for c in candidates:
        if c <= n and n % c == 0:
            return c
    return None


def full_image_encoder(x, fc_w, fc_b, conv_w, conv_b, *, k, out_h, out_w):
    """x: (N, C, H, W) f32.  fc_w: (hidden, C*ceil(H/k)*ceil(W/k)), fc_b:
    (hidden,), conv_w: (hidden, hidden, 1, 1), conv_b: (hidden,).
    Returns (N, hidden, out_h, out_w) f32 matching FullImageEncoder.forward
    in eval mode."""
    N, C, H, W = x.shape
    HW = H * W
    h_ = math.ceil(H / k)
    w_ = math.ceil(W / k)
    P = h_ * w_
    hidden = fc_w.shape[0]
    assert fc_w.shape == (hidden, C * P)

    # ---- stage 1: ceil-mode avg-pool as an MXU matmul ----------------------
    pool_mat = _make_pool_matrix(H, W, k)
    x_flat = x.reshape(N, C, HW)                         # free reshape, no gather
    # Largest channel tile that divides C and keeps each x block <= ~4 MiB
    # (double-buffered -> <= ~8 MiB of VMEM for the streamed input).
    ct_cands = tuple(
        c for c in (512, 256, 128, 64, 32, 16, 8) if c * HW * 4 <= 4 * 1024 * 1024
    )
    ct = _largest_divisor(C, ct_cands) or C

    pooled = pl.pallas_call(
        _pool_kernel,
        out_shape=jax.ShapeDtypeStruct((N, C, P), jnp.float32),
        grid_spec=pltpu.PrefetchScalarGridSpec(
            num_scalar_prefetch=0,
            grid=(N, C // ct),
            in_specs=[
                pl.BlockSpec((None, ct, HW), lambda n, c: (n, c, 0)),
                pl.BlockSpec((HW, P), lambda n, c: (0, 0)),
            ],
            out_specs=pl.BlockSpec((None, ct, P), lambda n, c: (n, c, 0)),
        ),
        compiler_params=pltpu.CompilerParams(
            dimension_semantics=("parallel", "parallel")
        ),
    )(x_flat, pool_mat)

    # Dropout2d is identity at inference (module.eval()); nothing to emit.
    # TODO(synk): training-mode stochastic channel dropout not implemented.

    # ---- stage 2: fc -> ReLU -> 1x1 conv -> ReLU ---------------------------
    flat = pooled.reshape(N, C * P)                      # tiny tensor, free reshape
    d1 = C * P
    tk = _largest_divisor(d1, (2048, 1024, 512, 256, 128))
    if tk is None:
        if d1 * hidden * 4 * 2 <= 8 * 1024 * 1024:
            tk = d1                                      # single full-extent K step
        else:
            # Pad the contraction axis with zeros so K tiles stay (8,128)-legal.
            tk = 512
            d1_pad = ((d1 + tk - 1) // tk) * tk
            flat = jnp.pad(flat, ((0, 0), (0, d1_pad - d1)))
            fc_w = jnp.pad(fc_w, ((0, 0), (0, d1_pad - d1)))
            d1 = d1_pad

    b1_2d = fc_b.reshape(1, hidden)
    w2 = conv_w.reshape(hidden, hidden)                  # (out, in), used as-is
    b2_2d = conv_b.reshape(1, hidden)

    y2 = pl.pallas_call(
        _fc_kernel,
        out_shape=jax.ShapeDtypeStruct((N, hidden), jnp.float32),
        grid_spec=pltpu.PrefetchScalarGridSpec(
            num_scalar_prefetch=0,
            grid=(d1 // tk,),
            in_specs=[
                pl.BlockSpec((N, tk), lambda kk: (0, kk)),
                pl.BlockSpec((hidden, tk), lambda kk: (0, kk)),
                pl.BlockSpec((1, hidden), lambda kk: (0, 0)),
                pl.BlockSpec((hidden, hidden), lambda kk: (0, 0)),
                pl.BlockSpec((1, hidden), lambda kk: (0, 0)),
            ],
            out_specs=pl.BlockSpec((N, hidden), lambda kk: (0, 0)),
            scratch_shapes=[pltpu.VMEM((N, hidden), jnp.float32)],
        ),
        compiler_params=pltpu.CompilerParams(dimension_semantics=("arbitrary",)),
    )(flat, fc_w, b1_2d, w2, b2_2d)

    # ---- stage 3: bilinear(align_corners) upsample from 1x1 == broadcast ---
    HWo = out_h * out_w
    y2_3d = y2.reshape(N, hidden, 1)                     # tiny, free reshape
    out_flat = pl.pallas_call(
        _broadcast_kernel,
        out_shape=jax.ShapeDtypeStruct((N, hidden, HWo), jnp.float32),
        grid_spec=pltpu.PrefetchScalarGridSpec(
            num_scalar_prefetch=0,
            grid=(N,),
            in_specs=[pl.BlockSpec((None, hidden, 1), lambda n: (n, 0, 0))],
            out_specs=pl.BlockSpec((None, hidden, HWo), lambda n: (n, 0, 0)),
        ),
        compiler_params=pltpu.CompilerParams(dimension_semantics=("parallel",)),
    )(y2_3d)

    return out_flat.reshape(N, hidden, out_h, out_w)


# ------------------------------ reference ------------------------------------


def _reference(x, fc_w, fc_b, conv_w, conv_b, *, k, out_h, out_w):
    """Pure-JAX mirror of the PyTorch forward (eval mode), written
    independently of the kernel (explicit clipped pooling windows)."""
    N, C, H, W = x.shape
    h_, w_ = math.ceil(H / k), math.ceil(W / k)
    rows = []
    for pi in range(h_):
        cols = []
        for pj in range(w_):
            win = x[:, :, pi * k:min((pi + 1) * k, H), pj * k:min((pj + 1) * k, W)]
            cols.append(jnp.mean(win, axis=(2, 3)))
        rows.append(jnp.stack(cols, axis=-1))
    pooled = jnp.stack(rows, axis=-2)                    # (N, C, h_, w_)
    flat = pooled.reshape(N, C * h_ * w_)
    hidden = fc_w.shape[0]
    y1 = jnp.maximum(flat @ fc_w.T + fc_b, 0.0)
    y2 = jnp.maximum(y1 @ conv_w.reshape(hidden, hidden).T + conv_b, 0.0)
    return jnp.broadcast_to(y2[:, :, None, None], (N, hidden, out_h, out_w))


if __name__ == "__main__":
    key = jax.random.PRNGKey(0)
    # NYU-flavoured small config: the real module uses C=2048 input channels;
    # the kernels are shape-generic, so we test with C=64 to keep it light.
    N, C, H, W = 2, 64, 33, 45
    k = 8
    h_, w_ = math.ceil(H / k), math.ceil(W / k)          # (5, 6), as in 'nyu'
    hidden = 512

    k0, k1, k2, k3, k4 = jax.random.split(key, 5)
    x = jax.random.normal(k0, (N, C, H, W), dtype=jnp.float32)
    fc_w = jax.random.normal(k1, (hidden, C * h_ * w_), dtype=jnp.float32) * 0.05
    fc_b = jax.random.normal(k2, (hidden,), dtype=jnp.float32) * 0.1
    conv_w = jax.random.normal(k3, (hidden, hidden, 1, 1), dtype=jnp.float32) * 0.1
    conv_b = jax.random.normal(k4, (hidden,), dtype=jnp.float32) * 0.1

    out = full_image_encoder(x, fc_w, fc_b, conv_w, conv_b, k=k, out_h=H, out_w=W)
    jax.block_until_ready(out)

    ref = _reference(x, fc_w, fc_b, conv_w, conv_b, k=k, out_h=H, out_w=W)
    assert out.shape == (N, hidden, H, W)
    assert jnp.allclose(out, ref, atol=5e-3, rtol=5e-3), float(
        jnp.max(jnp.abs(out - ref))
    )

    print("KERNEL_OK")
</pallas_src>

<mosaic_0001>
module attributes {stable_mosaic.version = 11 : i64} {
  func.func @_pool_kernel(%arg0: i32, %arg1: i32, %arg2: memref<1x64x1485xf32, #tpu.memory_space<vmem>>, %arg3: memref<1485x30xf32, #tpu.memory_space<vmem>>, %arg4: memref<1x64x30xf32, #tpu.memory_space<vmem>>) attributes {dimension_semantics = [#tpu.dimension_semantics<parallel>, #tpu.dimension_semantics<parallel>], iteration_bounds = array<i64: 2, 1>, scalar_prefetch = 0 : i64, scratch_operands = 0 : i64, tpu.core_type = #tpu.core_type<tc>, window_params = [{transform_indices = @transform_0, window_bounds = array<i64: 1, 64, 1485>}, {pipeline_mode = #tpu.pipeline_mode<synchronous>, transform_indices = @transform_1, window_bounds = array<i64: 1485, 30>}, {transform_indices = @transform_2, window_bounds = array<i64: 1, 64, 30>}]} {
    %c0 = arith.constant 0 : index
    %c0_0 = arith.constant 0 : index
    %c0_1 = arith.constant 0 : index
    %0 = vector.load %arg2[%c0, %c0_0, %c0_1] : memref<1x64x1485xf32, #tpu.memory_space<vmem>>, vector<1x64x1485xf32>
    %1 = vector.shape_cast %0 : vector<1x64x1485xf32> to vector<64x1485xf32>
    %c0_2 = arith.constant 0 : index
    %c0_3 = arith.constant 0 : index
    %2 = vector.load %arg3[%c0_2, %c0_3] : memref<1485x30xf32, #tpu.memory_space<vmem>>, vector<1485x30xf32>
    %cst = arith.constant dense<0.000000e+00> : vector<64x30xf32>
    %3 = tpu.matmul %1, %2, %cst {dimension_numbers = #tpu.dot_dimension_numbers<[1], [0], [0], [1], [0, 0, 1, 1], [], []>} : vector<64x1485xf32>, vector<1485x30xf32>, vector<64x30xf32> -> vector<64x30xf32>
    %c0_4 = arith.constant 0 : index
    %c0_5 = arith.constant 0 : index
    %c0_6 = arith.constant 0 : index
    %4 = vector.load %arg4[%c0_4, %c0_5, %c0_6] : memref<1x64x30xf32, #tpu.memory_space<vmem>>, vector<1x64x30xf32>
    %5 = vector.shape_cast %4 : vector<1x64x30xf32> to vector<64x30xf32>
    %6 = vector.shape_cast %3 : vector<64x30xf32> to vector<1x64x30xf32>
    tpu.vector_store %arg4[%c0_4, %c0_5, %c0_6], %6 {strides = array<i32>} : memref<1x64x30xf32, #tpu.memory_space<vmem>>, vector<1x64x30xf32>,
    return
  }
  func.func @transform_0(%arg0: i32, %arg1: i32) -> (i32, i32, i32) {
    %c0_i32 = arith.constant 0 : i32
    %c0_i32_0 = arith.constant 0 : i32
    return %arg0, %arg1, %c0_i32 : i32, i32, i32
  }
  func.func @transform_1(%arg0: i32, %arg1: i32) -> (i32, i32) {
    %c0_i32 = arith.constant 0 : i32
    %c0_i32_0 = arith.constant 0 : i32
    %c0_i32_1 = arith.constant 0 : i32
    return %c0_i32, %c0_i32_0 : i32, i32
  }
  func.func @transform_2(%arg0: i32, %arg1: i32) -> (i32, i32, i32) {
    %c0_i32 = arith.constant 0 : i32
    %c0_i32_0 = arith.constant 0 : i32
    return %arg0, %arg1, %c0_i32 : i32, i32, i32
  }
}

</mosaic_0001>

<bundles_post_ra>
// kernel: tpu_custom_call.1
= control target key start
LH: loop header
LB: loop body
LE: loop exit
PB: predicated region body
PF: predicated region fallthrough
CT: control target
= control target key end

     0   :  { %s1172_s9 = smov 0   ;;  %s1174_s10 = smov 0   ;;  %s1963_s0 = inlined_call_operand.vmem [shape: f32[2,64,1485], index: 0, kind: input, shape index: {}]   ;;  %s1964_s1 = inlined_call_operand.vmem [shape: f32[1485,30], index: 1, kind: input, shape index: {}]   ;;  %s1965_s2 = inlined_call_operand.vmem [shape: f32[2,64,30], index: 2, kind: output, shape index: {}]  }
   0x1   :  { %s1176_s11 = smov 0  }
   0x2 LB: > { %s24_s12 = sadd.s32 1, %s1151_s10  ;;  %p1092_p0 = scmp.ge.s32.totalorder %s1155_s11, 1  ;;  %s1155_s11 = sphi %s1176_s11, %s12_s11   ;;  %s1151_s10 = sphi %s1174_s10, %s1967_s10   ;;  %s1147_s9 = sphi %s1172_s9, %s1966_s9  }
   0x3   : > { %p26_p1 = scmp.ge.s32.totalorder %s24_s12, 2  ;;  %p134_p2 = scmp.lt.s32.totalorder %s1155_s11, 3 }
   0x5   : > { %s1969_s12 = smov (%p26_p1, %s24_s12), 0  ;;  %p135_p3 = pnand %p1092_p0, %p134_p2 }
   0x6   : > { %p166_p4 = scmp.lt.s32.totalorder (!%p135_p3), %s1147_s9, 1 }
   0x7   : > { %138 = sbr.rel (%p135_p3) target bundleno = 367 (0x16f), region = 28 }
   0xc   : > { %v297_v0 = vld [vmem:[%s1964_s1 + $0x78] sm:$0xff]  ;;  %v296_v2 = vld [vmem:[%s1964_s1 + $0x70] sm:$0xff]  ;;  %v295_v6 = vld [vmem:[%s1964_s1 + $0x68] sm:$0xff]  ;;  %s1971_s9 = smov (!%p166_p4, %s1147_s9), 1  ;;  %vm493_vm0 = vcmask 1044480   ;;  %vm468_vm1 = vcmask 629760  }
   0xd   : > { %v329_v1 = vld [vmem:[%s1964_s1 + $0x178] sm:$0xff]  ;;  %497 = vmatpush.msra.mxu0 %v297_v0  ;;  %v328_v4 = vld [vmem:[%s1964_s1 + $0x170] sm:$0xff]  ;;  %v327_v8 = vld [vmem:[%s1964_s1 + $0x168] sm:$0xff]  ;;  %s1108_s17 = smul.u32 768, %s1971_s9  ;;  %vm989_vm2 = vcmask 244736  }
   0xe   : > { %579 = vmatpush.msra.mxu2 %v329_v1  ;;  %v313_v3 = vld [vmem:[%s1964_s1 + $0xf8] sm:$0xff]  ;;  %v312_v7 = vld [vmem:[%s1964_s1 + $0xf0] sm:$0xff]  ;;  %v311_v10 = vld [vmem:[%s1964_s1 + $0xe8] sm:$0xff] }
   0xf   : > { %v345_v5 = vld [vmem:[%s1964_s1 + $0x1f8] sm:$0xff]  ;;  %538 = vmatpush.msra.mxu1 %v313_v3  ;;  %498 = vmatpush.msra.mxu0 %v296_v2  ;;  %v344_v9 = vld [vmem:[%s1964_s1 + $0x1f0] sm:$0xff]  ;;  %v294_v11 = vld [vmem:[%s1964_s1 + $0x60] sm:$0xff]  ;;  %s1376_s8 = scalar_lea.vmem %s1963_s0, %s1108_s17 }
  0x10   : > { %620 = vmatpush.msra.mxu3 %v345_v5  ;;  %580 = vmatpush.msra.mxu2 %v328_v4  ;;  %v326_v12 = vld [vmem:[%s1964_s1 + $0x160] sm:$0xff]  ;;  %v343_v13 = vld [vmem:[%s1964_s1 + $0x1e8] sm:$0xff]  ;;  %v293_v16 = vld [vmem:[%s1964_s1 + $0x58] sm:$0xff] }
  0x11   : > { %539 = vmatpush.msra.mxu1 %v312_v7  ;;  %499 = vmatpush.msra.mxu0 %v295_v6  ;;  %v310_v14 = vld [vmem:[%s1964_s1 + $0xe0] sm:$0xff]  ;;  %v325_v17 = vld [vmem:[%s1964_s1 + $0x158] sm:$0xff]  ;;  %v292_v20 = vld [vmem:[%s1964_s1 + $0x50] sm:$0xff] }
  0x12   : > { %621 = vmatpush.msra.mxu3 %v344_v9  ;;  %581 = vmatpush.msra.mxu2 %v327_v8  ;;  %v342_v15 = vld [vmem:[%s1964_s1 + $0x1e0] sm:$0xff]  ;;  %v309_v18 = vld [vmem:[%s1964_s1 + $0xd8] sm:$0xff]  ;;  %v324_v21 = vld [vmem:[%s1964_s1 + $0x150] sm:$0xff] }
  0x13   : > { %540 = vmatpush.msra.mxu1 %v311_v10  ;;  %500 = vmatpush.msra.mxu0 %v294_v11  ;;  %v341_v19 = vld [vmem:[%s1964_s1 + $0x1d8] sm:$0xff]  ;;  %v308_v22 = vld [vmem:[%s1964_s1 + $0xd0] sm:$0xff]  ;;  %v291_v24 = vld [vmem:[%s1964_s1 + $0x48] sm:$0xff] }
  0x14   : > { %622 = vmatpush.msra.mxu3 %v343_v13  ;;  %582 = vmatpush.msra.mxu2 %v326_v12  ;;  %v340_v23 = vld [vmem:[%s1964_s1 + $0x1d0] sm:$0xff]  ;;  %v323_v25 = vld [vmem:[%s1964_s1 + $0x148] sm:$0xff]  ;;  %v290_v28 = vld [vmem:[%s1964_s1 + $0x40] sm:$0xff] }
  0x15   : > { %541 = vmatpush.msra.mxu1 %v310_v14  ;;  %501 = vmatpush.msra.mxu0 %v293_v16  ;;  %v307_v26 = vld [vmem:[%s1964_s1 + $0xc8] sm:$0xff]  ;;  %v322_v29 = vld [vmem:[%s1964_s1 + $0x140] sm:$0xff]  ;;  %v289_v32 = vld [vmem:[%s1964_s1 + $0x38] sm:$0xff] }
  0x16   : > { %623 = vmatpush.msra.mxu3 %v342_v15  ;;  %583 = vmatpush.msra.mxu2 %v325_v17  ;;  %v339_v27 = vld [vmem:[%s1964_s1 + $0x1c8] sm:$0xff]  ;;  %v306_v30 = vld [vmem:[%s1964_s1 + $0xc0] sm:$0xff]  ;;  %v321_v33 = vld [vmem:[%s1964_s1 + $0x138] sm:$0xff] }
  0x17   : > { %542 = vmatpush.msra.mxu1 %v309_v18  ;;  %502 = vmatpush.msra.mxu0 %v292_v20  ;;  %v338_v31 = vld [vmem:[%s1964_s1 + $0x1c0] sm:$0xff]  ;;  %v305_v34 = vld [vmem:[%s1964_s1 + $0xb8] sm:$0xff]  ;;  %v288_v36 = vld [vmem:[%s1964_s1 + $0x30] sm:$0xff] }
  0x18   : > { %624 = vmatpush.msra.mxu3 %v341_v19  ;;  %584 = vmatpush.msra.mxu2 %v324_v21  ;;  %v337_v35 = vld [vmem:[%s1964_s1 + $0x1b8] sm:$0xff]  ;;  %v320_v37 = vld [vmem:[%s1964_s1 + $0x130] sm:$0xff]  ;;  %v287_v40 = vld [vmem:[%s1964_s1 + $0x28] sm:$0xff] }
  0x19   : > { %543 = vmatpush.msra.mxu1 %v308_v22  ;;  %503 = vmatpush.msra.mxu0 %v291_v24  ;;  %v304_v38 = vld [vmem:[%s1964_s1 + $0xb0] sm:$0xff]  ;;  %v319_v41 = vld [vmem:[%s1964_s1 + $0x128] sm:$0xff]  ;;  %v286_v44 = vld [vmem:[%s1964_s1 + $0x20] sm:$0xff] }
  0x1a   : > { %625 = vmatpush.msra.mxu3 %v340_v23  ;;  %585 = vmatpush.msra.mxu2 %v323_v25  ;;  %v336_v39 = vld [vmem:[%s1964_s1 + $0x1b0] sm:$0xff]  ;;  %v303_v42 = vld [vmem:[%s1964_s1 + $0xa8] sm:$0xff]  ;;  %v318_v45 = vld [vmem:[%s1964_s1 + $0x120] sm:$0xff] }
  0x1b   : > { %544 = vmatpush.msra.mxu1 %v307_v26  ;;  %504 = vmatpush.msra.mxu0 %v290_v28  ;;  %v335_v43 = vld [vmem:[%s1964_s1 + $0x1a8] sm:$0xff]  ;;  %v302_v46 = vld [vmem:[%s1964_s1 + $0xa0] sm:$0xff]  ;;  %v285_v48 = vld [vmem:[%s1964_s1 + $0x18] sm:$0xff] }
  0x1c   : > { %626 = vmatpush.msra.mxu3 %v339_v27  ;;  %586 = vmatpush.msra.mxu2 %v322_v29  ;;  %v334_v47 = vld [vmem:[%s1964_s1 + $0x1a0] sm:$0xff]  ;;  %v317_v49 = vld [vmem:[%s1964_s1 + $0x118] sm:$0xff]  ;;  %v284_v52 = vld [vmem:[%s1964_s1 + $0x10] sm:$0xff] }
  0x1d   : > { %545 = vmatpush.msra.mxu1 %v306_v30  ;;  %505 = vmatpush.msra.mxu0 %v289_v32  ;;  %v301_v50 = vld [vmem:[%s1964_s1 + $0x98] sm:$0xff]  ;;  %v316_v53 = vld [vmem:[%s1964_s1 + $0x110] sm:$0xff]  ;;  %v283_v56 = vld [vmem:[%s1964_s1 + $0x8] sm:$0xff] }
  0x1e   : > { %627 = vmatpush.msra.mxu3 %v338_v31  ;;  %587 = vmatpush.msra.mxu2 %v321_v33  ;;  %v333_v51 = vld [vmem:[%s1964_s1 + $0x198] sm:$0xff]  ;;  %v300_v54 = vld [vmem:[%s1964_s1 + $0x90] sm:$0xff]  ;;  %v315_v57 = vld [vmem:[%s1964_s1 + $0x108] sm:$0xff] }
  0x1f   : > { %546 = vmatpush.msra.mxu1 %v305_v34  ;;  %506 = vmatpush.msra.mxu0 %v288_v36  ;;  %v332_v55 = vld [vmem:[%s1964_s1 + $0x190] sm:$0xff]  ;;  %v299_v58 = vld [vmem:[%s1964_s1 + $0x88] sm:$0xff]  ;;  %v282_v60 = vld [vmem:[%s1964_s1] sm:$0xff] }
  0x20   : > { %628 = vmatpush.msra.mxu3 %v337_v35  ;;  %588 = vmatpush.msra.mxu2 %v320_v37  ;;  %v331_v59 = vld [vmem:[%s1964_s1 + $0x188] sm:$0xff]  ;;  %v314_v61 = vld [vmem:[%s1964_s1 + $0x100] sm:$0xff]  ;;  %v188_v63 = vld [vmem:[%s1376_s8 + $0x10] sm:$0xff] }
  0x21   : > { %547 = vmatpush.msra.mxu1 %v304_v38  ;;  %507 = vmatpush.msra.mxu0 %v287_v40  ;;  %v186_v62 = vld [vmem:[%s1376_s8] sm:$0xff]  ;;  %v393_v0 = vld [vmem:[%s1964_s1 + $0x378] sm:$0xff]  ;;  %v187_v3 = vld [vmem:[%s1376_s8 + $0x8] sm:$0xff] }
  0x22   : > { %629 = vmatpush.msra.mxu3 %v336_v39  ;;  %589 = vmatpush.msra.mxu2 %v319_v41  ;;  %v298_v1 = vld [vmem:[%s1964_s1 + $0x80] sm:$0xff]  ;;  %v189_v4 = vld [vmem:[%s1376_s8 + $0x18] sm:$0xff]  ;;  %v392_v8 = vld [vmem:[%s1964_s1 + $0x370] sm:$0xff] }
  0x23   : > { %548 = vmatpush.msra.mxu1 %v303_v42  ;;  %508 = vmatpush.msra.mxu0 %v286_v44  ;;  %v330_v2 = vld [vmem:[%s1964_s1 + $0x180] sm:$0xff]  ;;  %v361_v5 = vld [vmem:[%s1964_s1 + $0x278] sm:$0xff]  ;;  %v360_v9 = vld [vmem:[%s1964_s1 + $0x270] sm:$0xff] }
  0x24   : > { %630 = vmatpush.msra.mxu3 %v335_v43  ;;  %590 = vmatpush.msra.mxu2 %v318_v45  ;;  %v409_v6 = vld [vmem:[%s1964_s1 + $0x3f8] sm:$0xff]  ;;  %v408_v10 = vld [vmem:[%s1964_s1 + $0x3f0] sm:$0xff]  ;;  %v391_v12 = vld [vmem:[%s1964_s1 + $0x368] sm:$0xff] }
  0x25   : > { %549 = vmatpush.msra.mxu1 %v302_v46  ;;  %509 = vmatpush.msra.mxu0 %v285_v48  ;;  %v377_v7 = vld [vmem:[%s1964_s1 + $0x2f8] sm:$0xff]  ;;  %v376_v11 = vld [vmem:[%s1964_s1 + $0x2f0] sm:$0xff]  ;;  %v359_v13 = vld [vmem:[%s1964_s1 + $0x268] sm:$0xff] }
  0x26   : > { %631 = vmatpush.msra.mxu3 %v334_v47  ;;  %591 = vmatpush.msra.mxu2 %v317_v49  ;;  %v198_v14 = vld [vmem:[%s1376_s8 + $0x60] sm:$0xff]  ;;  %v200_v15 = vld [vmem:[%s1376_s8 + $0x70] sm:$0xff]  ;;  %v407_v16 = vld [vmem:[%s1964_s1 + $0x3e8] sm:$0xff] }
  0x27   : > { %550 = vmatpush.msra.mxu1 %v301_v50  ;;  %510 = vmatpush.msra.mxu0 %v284_v52  ;;  %v375_v17 = vld [vmem:[%s1964_s1 + $0x2e8] sm:$0xff]  ;;  %v390_v19 = vld [vmem:[%s1964_s1 + $0x360] sm:$0xff]  ;;  %v201_v20 = vld [vmem:[%s1376_s8 + $0x78] sm:$0xff] }
  0x28   : > { %632 = vmatpush.msra.mxu3 %v333_v51  ;;  %592 = vmatpush.msra.mxu2 %v316_v53  ;;  %v199_v18 = vld [vmem:[%s1376_s8 + $0x68] sm:$0xff]  ;;  %v358_v21 = vld [vmem:[%s1964_s1 + $0x260] sm:$0xff]  ;;  %v389_v24 = vld [vmem:[%s1964_s1 + $0x358] sm:$0xff] }
  0x29   : > { %551 = vmatpush.msra.mxu1 %v300_v54  ;;  %511 = vmatpush.msra.mxu0 %v283_v56  ;;  %v406_v22 = vld [vmem:[%s1964_s1 + $0x3e0] sm:$0xff]  ;;  %v357_v25 = vld [vmem:[%s1964_s1 + $0x258] sm:$0xff]  ;;  %v388_v28 = vld [vmem:[%s1964_s1 + $0x350] sm:$0xff] }
  0x2a   : > { %633 = vmatpush.msra.mxu3 %v332_v55  ;;  %593 = vmatpush.msra.mxu2 %v315_v57  ;;  %v374_v23 = vld [vmem:[%s1964_s1 + $0x2e0] sm:$0xff]  ;;  %v405_v26 = vld [vmem:[%s1964_s1 + $0x3d8] sm:$0xff]  ;;  %v356_v29 = vld [vmem:[%s1964_s1 + $0x250] sm:$0xff] }
  0x2b   : > { %552 = vmatpush.msra.mxu1 %v299_v58  ;;  %512 = vmatpush.msra.mxu0 %v282_v60  ;;  %v373_v27 = vld [vmem:[%s1964_s1 + $0x2d8] sm:$0xff]  ;;  %v210_v30 = vld [vmem:[%s1376_s8 + $0xc0] sm:$0xff]  ;;  %v212_v31 = vld [vmem:[%s1376_s8 + $0xd0] sm:$0xff] }
  0x2c   : > { %634 = vmatpush.msra.mxu3 %v331_v59  ;;  %594 = vmatpush.msra.mxu2 %v314_v61  ;;  %v404_v32 = vld [vmem:[%s1964_s1 + $0x3d0] sm:$0xff]  ;;  %v211_v34 = vld [vmem:[%s1376_s8 + $0xc8] sm:$0xff]  ;;  %v213_v36 = vld [vmem:[%s1376_s8 + $0xd8] sm:$0xff] }
  0x2d   : > { %513 = vmatmul.f32.vlgmr.msra.gmra.mxu0 %v186_v62  ;;  %595 = vmatmul.f32.vlgmr.msra.gmra.mxu2 %v188_v63  ;;  %v372_v33 = vld [vmem:[%s1964_s1 + $0x2d0] sm:$0xff]  ;;  %v387_v35 = vld [vmem:[%s1964_s1 + $0x348] sm:$0xff]  ;;  %v386_v40 = vld [vmem:[%s1964_s1 + $0x340] sm:$0xff] }
  0x2e   : > { %743 = vmatpush.msrb.mxu2 %v393_v0  ;;  %553 = vmatpush.msra.mxu1 %v298_v1  ;;  %v355_v37 = vld [vmem:[%s1964_s1 + $0x248] sm:$0xff]  ;;  %v354_v41 = vld [vmem:[%s1964_s1 + $0x240] sm:$0xff]  ;;  %v385_v44 = vld [vmem:[%s1964_s1 + $0x338] sm:$0xff] }
  0x2f   : > { %635 = vmatpush.msra.mxu3 %v330_v2  ;;  %554 = vmatmul.f32.vlgmr.msra.gmra.mxu1 %v187_v3  ;;  %v403_v38 = vld [vmem:[%s1964_s1 + $0x3c8] sm:$0xff]  ;;  %v402_v42 = vld [vmem:[%s1964_s1 + $0x3c0] sm:$0xff]  ;;  %v353_v45 = vld [vmem:[%s1964_s1 + $0x238] sm:$0xff] }
  0x30   : > { %636 = vmatmul.f32.vlgmr.msra.gmra.mxu3 %v189_v4  ;;  %661 = vmatpush.msrb.mxu0 %v361_v5  ;;  %v371_v39 = vld [vmem:[%s1964_s1 + $0x2c8] sm:$0xff]  ;;  %v370_v43 = vld [vmem:[%s1964_s1 + $0x2c0] sm:$0xff]  ;;  %v224_v47 = vld [vmem:[%s1376_s8 + $0x130] sm:$0xff] }
  0x31   : > { %784 = vmatpush.msrb.mxu3 %v409_v6  ;;  %702 = vmatpush.msrb.mxu1 %v377_v7  ;;  %v222_v46 = vld [vmem:[%s1376_s8 + $0x120] sm:$0xff]  ;;  %v401_v48 = vld [vmem:[%s1964_s1 + $0x3b8] sm:$0xff]  ;;  %v223_v50 = vld [vmem:[%s1376_s8 + $0x128] sm:$0xff] }
  0x32   : > { %744 = vmatpush.msrb.mxu2 %v392_v8  ;;  %662 = vmatpush.msrb.mxu0 %v360_v9  ;;  %v369_v49 = vld [vmem:[%s1964_s1 + $0x2b8] sm:$0xff]  ;;  %v384_v51 = vld [vmem:[%s1964_s1 + $0x330] sm:$0xff]  ;;  %v383_v56 = vld [vmem:[%s1964_s1 + $0x328] sm:$0xff] }
  0x33   : > { %785 = vmatpush.msrb.mxu3 %v408_v10  ;;  %703 = vmatpush.msrb.mxu1 %v376_v11  ;;  %v225_v52 = vld [vmem:[%s1376_s8 + $0x138] sm:$0xff]  ;;  %v352_v53 = vld [vmem:[%s1964_s1 + $0x230] sm:$0xff]  ;;  %v351_v57 = vld [vmem:[%s1964_s1 + $0x228] sm:$0xff] }
  0x34   : > { %745 = vmatpush.msrb.mxu2 %v391_v12  ;;  %663 = vmatpush.msrb.mxu0 %v359_v13  ;;  %v400_v54 = vld [vmem:[%s1964_s1 + $0x3b0] sm:$0xff]  ;;  %v399_v58 = vld [vmem:[%s1964_s1 + $0x3a8] sm:$0xff]  ;;  %v382_v60 = vld [vmem:[%s1964_s1 + $0x320] sm:$0xff] }
  0x35   : > { %516 = vmatmul.f32.gmra.mxu0 %v198_v14  ;;  %598 = vmatmul.f32.gmra.mxu2 %v200_v15  ;;  %v368_v55 = vld [vmem:[%s1964_s1 + $0x2b0] sm:$0xff]  ;;  %v367_v59 = vld [vmem:[%s1964_s1 + $0x2a8] sm:$0xff]  ;;  %v350_v61 = vld [vmem:[%s1964_s1 + $0x220] sm:$0xff] }
  0x36   : > { %786 = vmatpush.msrb.mxu3 %v407_v16  ;;  %704 = vmatpush.msrb.mxu1 %v375_v17  ;;  %v234_v62 = vld [vmem:[%s1376_s8 + $0x180] sm:$0xff]  ;;  %v236_v63 = vld [vmem:[%s1376_s8 + $0x190] sm:$0xff]  ;;  %v235_v2 = vld [vmem:[%s1376_s8 + $0x188] sm:$0xff] }
  0x37   : > { %557 = vmatmul.f32.gmra.mxu1 %v199_v18  ;;  %746 = vmatpush.msrb.mxu2 %v390_v19  ;;  %v398_v0 = vld [vmem:[%s1964_s1 + $0x3a0] sm:$0xff]  ;;  %v381_v3 = vld [vmem:[%s1964_s1 + $0x318] sm:$0xff]  ;;  %v380_v8 = vld [vmem:[%s1964_s1 + $0x310] sm:$0xff] }
  0x38   : > { %639 = vmatmul.f32.gmra.mxu3 %v201_v20  ;;  %664 = vmatpush.msrb.mxu0 %v358_v21  ;;  %v366_v1 = vld [vmem:[%s1964_s1 + $0x2a0] sm:$0xff]  ;;  %v237_v4 = vld [vmem:[%s1376_s8 + $0x198] sm:$0xff]  ;;  %v348_v9 = vld [vmem:[%s1964_s1 + $0x210] sm:$0xff] }
  0x39   : > { %787 = vmatpush.msrb.mxu3 %v406_v22  ;;  %705 = vmatpush.msrb.mxu1 %v374_v23  ;;  %v349_v5 = vld [vmem:[%s1964_s1 + $0x218] sm:$0xff]  ;;  %v396_v10 = vld [vmem:[%s1964_s1 + $0x390] sm:$0xff]  ;;  %v379_v12 = vld [vmem:[%s1964_s1 + $0x308] sm:$0xff] }
  0x3a   : > { %747 = vmatpush.msrb.mxu2 %v389_v24  ;;  %665 = vmatpush.msrb.mxu0 %v357_v25  ;;  %v397_v6 = vld [vmem:[%s1964_s1 + $0x398] sm:$0xff]  ;;  %v364_v11 = vld [vmem:[%s1964_s1 + $0x290] sm:$0xff]  ;;  %v347_v13 = vld [vmem:[%s1964_s1 + $0x208] sm:$0xff] }
  0x3b   : > { %788 = vmatpush.msrb.mxu3 %v405_v26  ;;  %706 = vmatpush.msrb.mxu1 %v373_v27  ;;  %v365_v7 = vld [vmem:[%s1964_s1 + $0x298] sm:$0xff]  ;;  %v246_v14 = vld [vmem:[%s1376_s8 + $0x1e0] sm:$0xff]  ;;  %v248_v15 = vld [vmem:[%s1376_s8 + $0x1f0] sm:$0xff] }
  0x3c   : > { %748 = vmatpush.msrb.mxu2 %v388_v28  ;;  %666 = vmatpush.msrb.mxu0 %v356_v29  ;;  %v395_v16 = vld [vmem:[%s1964_s1 + $0x388] sm:$0xff]  ;;  %v378_v19 = vld [vmem:[%s1964_s1 + $0x300] sm:$0xff]  ;;  %v249_v20 = vld [vmem:[%s1376_s8 + $0x1f8] sm:$0xff] }
  0x3d   : > { %519 = vmatmul.f32.gmra.mxu0 %v210_v30  ;;  %601 = vmatmul.f32.gmra.mxu2 %v212_v31  ;;  %v363_v17 = vld [vmem:[%s1964_s1 + $0x288] sm:$0xff]  ;;  %v346_v21 = vld [vmem:[%s1964_s1 + $0x200] sm:$0xff]  ;;  %v457_v24 = vld [vmem:[%s1964_s1 + $0x578] sm:$0xff] }
  0x3e   : > { %789 = vmatpush.msrb.mxu3 %v404_v32  ;;  %707 = vmatpush.msrb.mxu1 %v372_v33  ;;  %v247_v18 = vld [vmem:[%s1376_s8 + $0x1e8] sm:$0xff]  ;;  %v394_v22 = vld [vmem:[%s1964_s1 + $0x380] sm:$0xff]  ;;  %v425_v25 = vld [vmem:[%s1964_s1 + $0x478] sm:$0xff] }
  0x3f   : > { %560 = vmatmul.f32.gmra.mxu1 %v211_v34  ;;  %749 = vmatpush.msrb.mxu2 %v387_v35  ;;  %v362_v23 = vld [vmem:[%s1964_s1 + $0x280] sm:$0xff]  ;;  %v467_v26 = vld [vmem:[%s1964_s1 + $0x5c8] sm:$0x1f]  ;;  %v441_v27 = vld [vmem:[%s1964_s1 + $0x4f8] sm:$0xff] }
  0x40   : > { %642 = vmatmul.f32.gmra.mxu3 %v213_v36  ;;  %667 = vmatpush.msrb.mxu0 %v355_v37  ;;  %v456_v28 = vld [vmem:[%s1964_s1 + $0x570] sm:$0xff]  ;;  %v258_v30 = vld [vmem:[%s1376_s8 + $0x240] sm:$0xff]  ;;  %v455_v33 = vld [vmem:[%s1964_s1 + $0x568] sm:$0xff] }
  0x41   : > { %790 = vmatpush.msrb.mxu3 %v403_v38  ;;  %708 = vmatpush.msrb.mxu1 %v371_v39  ;;  %v424_v29 = vld [vmem:[%s1964_s1 + $0x470] sm:$0xff]  ;;  %v259_v34 = vld [vmem:[%s1376_s8 + $0x248] sm:$0xff]  ;;  %v466_v35 = vld [vmem:[%s1964_s1 + $0x5c0] sm:$0xff] }
  0x42   : > { %750 = vmatpush.msrb.mxu2 %v386_v40  ;;  %668 = vmatpush.msrb.mxu0 %v354_v41  ;;  %v260_v31 = vld [vmem:[%s1376_s8 + $0x250] sm:$0xff]  ;;  %v261_v36 = vld [vmem:[%s1376_s8 + $0x258] sm:$0xff]  ;;  %v423_v37 = vld [vmem:[%s1964_s1 + $0x468] sm:$0xff] }
  0x43   : > { %791 = vmatpush.msrb.mxu3 %v402_v42  ;;  %709 = vmatpush.msrb.mxu1 %v370_v43  ;;  %v440_v32 = vld [vmem:[%s1964_s1 + $0x4f0] sm:$0xff]  ;;  %v439_v38 = vld [vmem:[%s1964_s1 + $0x4e8] sm:$0xff]  ;;  %v454_v39 = vld [vmem:[%s1964_s1 + $0x560] sm:$0xff] }
  0x44   : > { %751 = vmatpush.msrb.mxu2 %v385_v44  ;;  %669 = vmatpush.msrb.mxu0 %v353_v45  ;;  %v422_v40 = vld [vmem:[%s1964_s1 + $0x460] sm:$0xff]  ;;  %v465_v41 = vld [vmem:[%s1964_s1 + $0x5b8] sm:$0xff]  ;;  %v464_v45 = vld [vmem:[%s1964_s1 + $0x5b0] sm:$0xff] }
  0x45   : > { %522 = vmatmul.f32.gmra.mxu0 %v222_v46  ;;  %604 = vmatmul.f32.gmra.mxu2 %v224_v47  ;;  %v438_v42 = vld [vmem:[%s1964_s1 + $0x4e0] sm:$0xff]  ;;  %v453_v43 = vld [vmem:[%s1964_s1 + $0x558] sm:$0xff]  ;;  %v272_v47 = vld [vmem:[%s1376_s8 + $0x2b0] sm:$0xff] }
  0x46   : > { %792 = vmatpush.msrb.mxu3 %v401_v48  ;;  %710 = vmatpush.msrb.mxu1 %v369_v49  ;;  %v421_v44 = vld [vmem:[%s1964_s1 + $0x458] sm:$0xff]  ;;  %v270_v46 = vld [vmem:[%s1376_s8 + $0x2a0] sm:$0xff]  ;;  %v452_v49 = vld [vmem:[%s1964_s1 + $0x550] sm:$0xff] }
  0x47   : > { %563 = vmatmul.f32.gmra.mxu1 %v223_v50  ;;  %752 = vmatpush.msrb.mxu2 %v384_v51  ;;  %v437_v48 = vld [vmem:[%s1964_s1 + $0x4d8] sm:$0xff]  ;;  %v271_v50 = vld [vmem:[%s1376_s8 + $0x2a8] sm:$0xff]  ;;  %v420_v51 = vld [vmem:[%s1964_s1 + $0x450] sm:$0xff] }
  0x48   : > { %645 = vmatmul.f32.gmra.mxu3 %v225_v52  ;;  %670 = vmatpush.msrb.mxu0 %v352_v53  ;;  %v273_v52 = vld [vmem:[%s1376_s8 + $0x2b8] sm:$0xff]  ;;  %v436_v53 = vld [vmem:[%s1964_s1 + $0x4d0] sm:$0xff] }
  0x49   : > { %793 = vmatpush.msrb.mxu3 %v400_v54  ;;  %711 = vmatpush.msrb.mxu1 %v368_v55  ;;  %v451_v54 = vld [vmem:[%s1964_s1 + $0x548] sm:$0xff] }
  0x4a   : > { %753 = vmatpush.msrb.mxu2 %v383_v56  ;;  %671 = vmatpush.msrb.mxu0 %v351_v57  ;;  %v419_v55 = vld [vmem:[%s1964_s1 + $0x448] sm:$0xff]  ;;  %v450_v57 = vld [vmem:[%s1964_s1 + $0x540] sm:$0xff] }
  0x4b   : > { %794 = vmatpush.msrb.mxu3 %v399_v58  ;;  %712 = vmatpush.msrb.mxu1 %v367_v59  ;;  %v435_v56 = vld [vmem:[%s1964_s1 + $0x4c8] sm:$0xff]  ;;  %v418_v59 = vld [vmem:[%s1964_s1 + $0x440] sm:$0xff] }
  0x4c   : > { %754 = vmatpush.msrb.mxu2 %v382_v60  ;;  %672 = vmatpush.msrb.mxu0 %v350_v61  ;;  %v463_v58 = vld [vmem:[%s1964_s1 + $0x5a8] sm:$0xff]  ;;  %v190_v60 = vld [vmem:[%s1376_s8 + $0x20] sm:$0xff]  ;;  %v192_v61 = vld [vmem:[%s1376_s8 + $0x30] sm:$0xff] }
  0x4d   : > { %525 = vmatmul.f32.gmra.mxu0 %v234_v62  ;;  %607 = vmatmul.f32.gmra.mxu2 %v236_v63  ;;  %v191_v62 = vld [vmem:[%s1376_s8 + $0x28] sm:$0xff]  ;;  %v193_v63 = vld [vmem:[%s1376_s8 + $0x38] sm:$0xff] }
  0x4e   : > { %795 = vmatpush.msrb.mxu3 %v398_v0  ;;  %713 = vmatpush.msrb.mxu1 %v366_v1  ;;  %v434_v0 = vld [vmem:[%s1964_s1 + $0x4c0] sm:$0xff]  ;;  %v449_v1 = vld [vmem:[%s1964_s1 + $0x538] sm:$0xff] }
  0x4f   : > { %566 = vmatmul.f32.gmra.mxu1 %v235_v2  ;;  %755 = vmatpush.msrb.mxu2 %v381_v3  ;;  %v417_v2 = vld [vmem:[%s1964_s1 + $0x438] sm:$0xff]  ;;  %v462_v3 = vld [vmem:[%s1964_s1 + $0x5a0] sm:$0xff] }
  0x50   : > { %648 = vmatmul.f32.gmra.mxu3 %v237_v4  ;;  %673 = vmatpush.msrb.mxu0 %v349_v5  ;;  %v433_v4 = vld [vmem:[%s1964_s1 + $0x4b8] sm:$0xff]  ;;  %v448_v5 = vld [vmem:[%s1964_s1 + $0x530] sm:$0xff] }
  0x51   : > { %796 = vmatpush.msrb.mxu3 %v397_v6  ;;  %714 = vmatpush.msrb.mxu1 %v365_v7  ;;  %v416_v6 = vld [vmem:[%s1964_s1 + $0x430] sm:$0xff]  ;;  %v202_v7 = vld [vmem:[%s1376_s8 + $0x80] sm:$0xff] }
  0x52   : > { %756 = vmatpush.msrb.mxu2 %v380_v8  ;;  %674 = vmatpush.msrb.mxu0 %v348_v9  ;;  %v204_v8 = vld [vmem:[%s1376_s8 + $0x90] sm:$0xff]  ;;  %v203_v9 = vld [vmem:[%s1376_s8 + $0x88] sm:$0xff] }
  0x53   : > { %797 = vmatpush.msrb.mxu3 %v396_v10  ;;  %715 = vmatpush.msrb.mxu1 %v364_v11  ;;  %v205_v10 = vld [vmem:[%s1376_s8 + $0x98] sm:$0xff]  ;;  %v432_v11 = vld [vmem:[%s1964_s1 + $0x4b0] sm:$0xff] }
  0x54   : > { %757 = vmatpush.msrb.mxu2 %v379_v12  ;;  %675 = vmatpush.msrb.mxu0 %v347_v13  ;;  %v447_v12 = vld [vmem:[%s1964_s1 + $0x528] sm:$0xff]  ;;  %v461_v13 = vld [vmem:[%s1964_s1 + $0x598] sm:$0xff] }
  0x55   : > { %528 = vmatmul.f32.gmra.mxu0 %v246_v14  ;;  %610 = vmatmul.f32.gmra.mxu2 %v248_v15  ;;  %v415_v14 = vld [vmem:[%s1964_s1 + $0x428] sm:$0xff] }
  0x56   : > { %798 = vmatpush.msrb.mxu3 %v395_v16  ;;  %716 = vmatpush.msrb.mxu1 %v363_v17  ;;  %v431_v15 = vld [vmem:[%s1964_s1 + $0x4a8] sm:$0xff]  ;;  %v446_v16 = vld [vmem:[%s1964_s1 + $0x520] sm:$0xff] }
  0x57   : > { %569 = vmatmul.f32.gmra.mxu1 %v247_v18  ;;  %758 = vmatpush.msrb.mxu2 %v378_v19  ;;  %v414_v17 = vld [vmem:[%s1964_s1 + $0x420] sm:$0xff]  ;;  %v460_v18 = vld [vmem:[%s1964_s1 + $0x590] sm:$0xff] }
  0x58   : > { %651 = vmatmul.f32.gmra.mxu3 %v249_v20  ;;  %676 = vmatpush.msrb.mxu0 %v346_v21  ;;  %v214_v19 = vld [vmem:[%s1376_s8 + $0xe0] sm:$0xff]  ;;  %v216_v20 = vld [vmem:[%s1376_s8 + $0xf0] sm:$0xff]  ;;  %v215_v21 = vld [vmem:[%s1376_s8 + $0xe8] sm:$0xff] }
  0x59   : > { %799 = vmatpush.msrb.mxu3 %v394_v22  ;;  %717 = vmatpush.msrb.mxu1 %v362_v23  ;;  %v217_v22 = vld [vmem:[%s1376_s8 + $0xf8] sm:$0xff]  ;;  %v430_v23 = vld [vmem:[%s1964_s1 + $0x4a0] sm:$0xff] }
  0x5a   : > { %907 = vmatpush.msra.mxu2 %v457_v24  ;;  %825 = vmatpush.msra.mxu0 %v425_v25  ;;  %v445_v24 = vld [vmem:[%s1964_s1 + $0x518] sm:$0xff] }
  0x5b   : > { %1096 = vmatpush.msk.msra.mxu3 %vm493_vm0, %v467_v26  ;;  %866 = vmatpush.msra.mxu1 %v441_v27  ;;  %v413_v25 = vld [vmem:[%s1964_s1 + $0x418] sm:$0xff]  ;;  %v444_v27 = vld [vmem:[%s1964_s1 + $0x510] sm:$0xff] }
  0x5c   : > { %908 = vmatpush.msra.mxu2 %v456_v28  ;;  %826 = vmatpush.msra.mxu0 %v424_v29  ;;  %v429_v26 = vld [vmem:[%s1964_s1 + $0x498] sm:$0xff]  ;;  %v412_v28 = vld [vmem:[%s1964_s1 + $0x410] sm:$0xff]  ;;  %v459_v29 = vld [vmem:[%s1964_s1 + $0x588] sm:$0xff] }
  0x5d   : > { %531 = vmatmul.f32.gmra.mxu0 %v258_v30  ;;  %613 = vmatmul.f32.gmra.mxu2 %v260_v31  ;;  %v226_v30 = vld [vmem:[%s1376_s8 + $0x140] sm:$0xff]  ;;  %v228_v31 = vld [vmem:[%s1376_s8 + $0x150] sm:$0xff] }
  0x5e   : > { %867 = vmatpush.msra.mxu1 %v440_v32  ;;  %909 = vmatpush.msra.mxu2 %v455_v33  ;;  %v227_v32 = vld [vmem:[%s1376_s8 + $0x148] sm:$0xff]  ;;  %v229_v33 = vld [vmem:[%s1376_s8 + $0x158] sm:$0xff] }
  0x5f   : > { %572 = vmatmul.f32.gmra.mxu1 %v259_v34  ;;  %955 = vmatpush.msra.mxu3 %v466_v35  ;;  %v428_v34 = vld [vmem:[%s1964_s1 + $0x490] sm:$0xff]  ;;  %v443_v35 = vld [vmem:[%s1964_s1 + $0x508] sm:$0xff] }
  0x60   : > { %654 = vmatmul.f32.gmra.mxu3 %v261_v36  ;;  %827 = vmatpush.msra.mxu0 %v423_v37  ;;  %v411_v36 = vld [vmem:[%s1964_s1 + $0x408] sm:$0xff] }
  0x61   : > { %868 = vmatpush.msra.mxu1 %v439_v38  ;;  %910 = vmatpush.msra.mxu2 %v454_v39  ;;  %v427_v37 = vld [vmem:[%s1964_s1 + $0x488] sm:$0xff]  ;;  %v442_v38 = vld [vmem:[%s1964_s1 + $0x500] sm:$0xff] }
  0x62   : > { %828 = vmatpush.msra.mxu0 %v422_v40  ;;  %956 = vmatpush.msra.mxu3 %v465_v41  ;;  %v458_v39 = vld [vmem:[%s1964_s1 + $0x580] sm:$0xff]  ;;  %v240_v41 = vld [vmem:[%s1376_s8 + $0x1b0] sm:$0xff] }
  0x63   : > { %869 = vmatpush.msra.mxu1 %v438_v42  ;;  %911 = vmatpush.msra.mxu2 %v453_v43  ;;  %v238_v40 = vld [vmem:[%s1376_s8 + $0x1a0] sm:$0xff]  ;;  %v239_v43 = vld [vmem:[%s1376_s8 + $0x1a8] sm:$0xff] }
  0x64   : > { %829 = vmatpush.msra.mxu0 %v421_v44  ;;  %957 = vmatpush.msra.mxu3 %v464_v45  ;;  %v410_v42 = vld [vmem:[%s1964_s1 + $0x400] sm:$0xff]  ;;  %v241_v44 = vld [vmem:[%s1376_s8 + $0x1b8] sm:$0xff] }
  0x65   : > { %534 = vmatmul.f32.gmra.mxu0 %v270_v46  ;;  %616 = vmatmul.f32.gmra.mxu2 %v272_v47  ;;  %v426_v45 = vld [vmem:[%s1964_s1 + $0x480] sm:$0xff]  ;;  %v252_v47 = vld [vmem:[%s1376_s8 + $0x210] sm:$0xff] }
  0x66   : > { %870 = vmatpush.msra.mxu1 %v437_v48  ;;  %912 = vmatpush.msra.mxu2 %v452_v49  ;;  %v250_v46 = vld [vmem:[%s1376_s8 + $0x200] sm:$0xff]  ;;  %v251_v48 = vld [vmem:[%s1376_s8 + $0x208] sm:$0xff]  ;;  %v253_v49 = vld [vmem:[%s1376_s8 + $0x218] sm:$0xff] }
  0x67   : > { %575 = vmatmul.f32.gmra.mxu1 %v271_v50  ;;  %830 = vmatpush.msra.mxu0 %v420_v51  ;;  %v262_v50 = vld [vmem:[%s1376_s8 + $0x260] sm:$0xff]  ;;  %v264_v51 = vld [vmem:[%s1376_s8 + $0x270] sm:$0xff] }
  0x68   : > { %657 = vmatmul.f32.gmra.mxu3 %v273_v52  ;;  %871 = vmatpush.msra.mxu1 %v436_v53  ;;  %v263_v52 = vld [vmem:[%s1376_s8 + $0x268] sm:$0xff]  ;;  %v265_v53 = vld [vmem:[%s1376_s8 + $0x278] sm:$0xff] }
  0x69   : > { %913 = vmatpush.msra.mxu2 %v451_v54  ;;  %831 = vmatpush.msra.mxu0 %v419_v55  ;;  %v274_v54 = vld [vmem:[%s1376_s8 + $0x2c0] sm:$0xff]  ;;  %v276_v55 = vld [vmem:[%s1376_s8 + $0x2d0] sm:$0xff] }
  0x6a   : > { %872 = vmatpush.msra.mxu1 %v435_v56  ;;  %958 = vmatpush.msra.mxu3 %v463_v58  ;;  %v275_v56 = vld [vmem:[%s1376_s8 + $0x2c8] sm:$0xff] }
  0x6b   : > { %914 = vmatpush.msra.mxu2 %v450_v57  ;;  %832 = vmatpush.msra.mxu0 %v418_v59  ;;  %v277_v57 = vld [vmem:[%s1376_s8 + $0x2d8] sm:$0xff]  ;;  %v194_v59 = vld [vmem:[%s1376_s8 + $0x40] sm:$0xff] }
  0x6c   : > { %873 = vmatpush.msra.mxu1 %v434_v0  ;;  %959 = vmatpush.msra.mxu3 %v462_v3  ;;  %v197_v0 = vld [vmem:[%s1376_s8 + $0x58] sm:$0xff] }
  0x6d   : > { %677 = vmatmul.f32.vlgmr.msrb.gmra.mxu0 %v190_v60  ;;  %759 = vmatmul.f32.vlgmr.msrb.gmra.mxu2 %v192_v61  ;;  %v196_v60 = vld [vmem:[%s1376_s8 + $0x50] sm:$0xff] }
  0x6e   : > { %915 = vmatpush.msra.mxu2 %v449_v1  ;;  %833 = vmatpush.msra.mxu0 %v417_v2 }
  0x6f   : > { %718 = vmatmul.f32.vlgmr.msrb.gmra.mxu1 %v191_v62  ;;  %960 = vmatpush.msra.mxu3 %v461_v13  ;;  %v195_v62 = vld [vmem:[%s1376_s8 + $0x48] sm:$0xff] }
  0x70   : > { %800 = vmatmul.f32.vlgmr.msrb.gmra.mxu3 %v193_v63  ;;  %874 = vmatpush.msra.mxu1 %v433_v4  ;;  %v206_v4 = vld [vmem:[%s1376_s8 + $0xa0] sm:$0xff] }
  0x71   : > { %916 = vmatpush.msra.mxu2 %v448_v5  ;;  %834 = vmatpush.msra.mxu0 %v416_v6  ;;  %v208_v5 = vld [vmem:[%s1376_s8 + $0xb0] sm:$0xff] }
  0x72   : > { %875 = vmatpush.msra.mxu1 %v432_v11  ;;  %961 = vmatpush.msra.mxu3 %v460_v18  ;;  %v209_v11 = vld [vmem:[%s1376_s8 + $0xb8] sm:$0xff] }
  0x73   : > { %917 = vmatpush.msra.mxu2 %v447_v12  ;;  %835 = vmatpush.msra.mxu0 %v415_v14 }
  0x74   : > { %876 = vmatpush.msra.mxu1 %v431_v15  ;;  %962 = vmatpush.msra.mxu3 %v459_v29  ;;  %v218_v15 = vld [vmem:[%s1376_s8 + $0x100] sm:$0xff] }
  0x75   : > { %680 = vmatmul.f32.gmra.mxu0 %v202_v7  ;;  %762 = vmatmul.f32.gmra.mxu2 %v204_v8 }
  0x76   : > { %918 = vmatpush.msra.mxu2 %v446_v16  ;;  %836 = vmatpush.msra.mxu0 %v414_v17  ;;  %v220_v16 = vld [vmem:[%s1376_s8 + $0x110] sm:$0xff] }
  0x77   : > { %721 = vmatmul.f32.gmra.mxu1 %v203_v9  ;;  %963 = vmatpush.msra.mxu3 %v458_v39  ;;  %v207_v9 = vld [vmem:[%s1376_s8 + $0xa8] sm:$0xff] }
  0x78   : > { %803 = vmatmul.f32.gmra.mxu3 %v205_v10  ;;  %877 = vmatpush.msra.mxu1 %v430_v23 }
  0x79   : > { %919 = vmatpush.msra.mxu2 %v445_v24  ;;  %837 = vmatpush.msra.mxu0 %v413_v25 }
  0x7a   : > { %878 = vmatpush.msra.mxu1 %v429_v26  ;;  %v230_v26 = vld [vmem:[%s1376_s8 + $0x160] sm:$0xff] }
  0x7b   : > { %920 = vmatpush.msra.mxu2 %v444_v27  ;;  %838 = vmatpush.msra.mxu0 %v412_v28  ;;  %v232_v27 = vld [vmem:[%s1376_s8 + $0x170] sm:$0xff] }
  0x7c   : > { %879 = vmatpush.msra.mxu1 %v428_v34 }
  0x7d   : > { %683 = vmatmul.f32.gmra.mxu0 %v214_v19  ;;  %765 = vmatmul.f32.gmra.mxu2 %v216_v20  ;;  %v219_v20 = vld [vmem:[%s1376_s8 + $0x108] sm:$0xff] }
  0x7e   : > { %921 = vmatpush.msra.mxu2 %v443_v35  ;;  %839 = vmatpush.msra.mxu0 %v411_v36 }
  0x7f   : > { %724 = vmatmul.f32.gmra.mxu1 %v215_v21 }
  0x80   : > { %806 = vmatmul.f32.gmra.mxu3 %v217_v22  ;;  %880 = vmatpush.msra.mxu1 %v427_v37  ;;  %v221_v22 = vld [vmem:[%s1376_s8 + $0x118] sm:$0xff]  ;;  %v242_v37 = vld [vmem:[%s1376_s8 + $0x1c0] sm:$0xff] }
  0x81   : > { %922 = vmatpush.msra.mxu2 %v442_v38  ;;  %840 = vmatpush.msra.mxu0 %v410_v42  ;;  %v244_v38 = vld [vmem:[%s1376_s8 + $0x1d0] sm:$0xff]  ;;  %v243_v42 = vld [vmem:[%s1376_s8 + $0x1c8] sm:$0xff] }
  0x82   : > { %881 = vmatpush.msra.mxu1 %v426_v45 }
  0x85   : > { %686 = vmatmul.f32.gmra.mxu0 %v226_v30  ;;  %768 = vmatmul.f32.gmra.mxu2 %v228_v31  ;;  %v231_v31 = vld [vmem:[%s1376_s8 + $0x168] sm:$0xff] }
  0x87   : > { %727 = vmatmul.f32.gmra.mxu1 %v227_v32 }
  0x88   : > { %809 = vmatmul.f32.gmra.mxu3 %v229_v33  ;;  %v233_v33 = vld [vmem:[%s1376_s8 + $0x178] sm:$0xff] }
  0x8d   : > { %689 = vmatmul.f32.gmra.mxu0 %v238_v40  ;;  %771 = vmatmul.f32.gmra.mxu2 %v240_v41 }
  0x8f   : > { %730 = vmatmul.f32.gmra.mxu1 %v239_v43 }
  0x90   : > { %812 = vmatmul.f32.gmra.mxu3 %v241_v44  ;;  %v245_v44 = vld [vmem:[%s1376_s8 + $0x1d8] sm:$0xff] }
  0x95   : > { %692 = vmatmul.f32.gmra.mxu0 %v250_v46  ;;  %774 = vmatmul.f32.gmra.mxu2 %v252_v47 }
  0x97   : > { %733 = vmatmul.f32.gmra.mxu1 %v251_v48  ;;  %v254_v48 = vld [vmem:[%s1376_s8 + $0x220] sm:$0xff] }
  0x98   : > { %815 = vmatmul.f32.gmra.mxu3 %v253_v49  ;;  %v256_v49 = vld [vmem:[%s1376_s8 + $0x230] sm:$0xff] }
  0x9d   : > { %695 = vmatmul.f32.gmra.mxu0 %v262_v50  ;;  %777 = vmatmul.f32.gmra.mxu2 %v264_v51 }
  0x9f   : > { %736 = vmatmul.f32.gmra.mxu1 %v263_v52 }
  0xa0   : > { %818 = vmatmul.f32.gmra.mxu3 %v265_v53  ;;  %v255_v53 = vld [vmem:[%s1376_s8 + $0x228] sm:$0xff] }
  0xa5   : > { %698 = vmatmul.f32.gmra.mxu0 %v274_v54  ;;  %780 = vmatmul.f32.gmra.mxu2 %v276_v55  ;;  %v257_v55 = vld [vmem:[%s1376_s8 + $0x238] sm:$0xff] }
  0xa7   : > { %739 = vmatmul.f32.gmra.mxu1 %v275_v56 }
  0xa8   : > { %821 = vmatmul.f32.gmra.mxu3 %v277_v57 }
  0xaa   : > { %v514_v58 = vpop.f32.mrf.mxu0 }
  0xac   : > { %v555_v61 = vpop.f32.mrf.mxu1 }
  0xad   : > { %v556_v63 = vadd.f32 %v555_v61, %v514_v58  ;;  %841 = vmatmul.f32.vlgmr.msra.gmra.mxu0 %v194_v59  ;;  %923 = vmatmul.f32.vlgmr.msra.gmra.mxu2 %v196_v60  ;;  %v266_v59 = vld [vmem:[%s1376_s8 + $0x280] sm:$0xff]  ;;  %v268_v60 = vld [vmem:[%s1376_s8 + $0x290] sm:$0xff] }
  0xaf   : > { %882 = vmatmul.f32.vlgmr.msra.gmra.mxu1 %v195_v62 }
  0xb0   : > { %1097 = vmatmul.msk.f32.vlgmr.msra.gmra.mxu3 %vm468_vm1, %v197_v0  ;;  %v596_v1 = vpop.f32.mrf.mxu2  ;;  %v267_v0 = vld [vmem:[%s1376_s8 + $0x288] sm:$0xff] }
  0xb1   : > { %v597_v2 = vadd.f32 %v596_v1, %v556_v63 }
  0xb2   : > { %v517_v3 = vpop.f32.mrf.mxu0 }
  0xb3   : > { %v637_v6 = vpop.f32.mrf.mxu3 }
  0xb4   : > { %v1833_v7 = vadd.f32 %v637_v6, %v597_v2  ;;  %v558_v8 = vpop.f32.mrf.mxu1  ;;  %v269_v2 = vld [vmem:[%s1376_s8 + $0x298] sm:$0xff]  ;;  %v278_v6 = vld [vmem:[%s1376_s8 + $0x2e0] sm:$0xff] }
  0xb5   : > { %v559_v10 = vadd.f32 %v558_v8, %v517_v3  ;;  %844 = vmatmul.f32.gmra.mxu0 %v206_v4  ;;  %926 = vmatmul.f32.gmra.mxu2 %v208_v5  ;;  %v280_v8 = vld [vmem:[%s1376_s8 + $0x2f0] sm:$0xff] }
  0xb7   : > { %885 = vmatmul.f32.gmra.mxu1 %v207_v9 }
  0xb8   : > { %1098 = vmatmul.msk.f32.gmra.mxu3 %vm468_vm1, %v209_v11  ;;  %v599_v12 = vpop.f32.mrf.mxu2 }
  0xb9   : > { %v600_v13 = vadd.f32 %v599_v12, %v559_v10  ;;  %v279_v12 = vld [vmem:[%s1376_s8 + $0x2e8] sm:$0xff] }
  0xba   : > { %v520_v14 = vpop.f32.mrf.mxu0 }
  0xbb   : > { %v640_v17 = vpop.f32.mrf.mxu3 }
  0xbc   : > { %v1840_v18 = vadd.f32 %v640_v17, %v600_v13  ;;  %v561_v19 = vpop.f32.mrf.mxu1 }
  0xbd   : > { %v562_v21 = vadd.f32 %v561_v19, %v520_v14  ;;  %847 = vmatmul.f32.gmra.mxu0 %v218_v15  ;;  %929 = vmatmul.f32.gmra.mxu2 %v220_v16  ;;  %v281_v14 = vld [vmem:[%s1376_s8 + $0x2f8] sm:$0xff]  ;;  %s1107_s8 = sshll.u32 %s1971_s9, 6 }
  0xbe   : > { %s1917_s19 = scalar_lea.vmem %s1965_s2, %s1107_s8 }
  0xbf   : > { %888 = vmatmul.f32.gmra.mxu1 %v219_v20 }
  0xc0   : > { %1099 = vmatmul.msk.f32.gmra.mxu3 %vm468_vm1, %v221_v22  ;;  %v602_v23 = vpop.f32.mrf.mxu2 }
  0xc1   : > { %v603_v24 = vadd.f32 %v602_v23, %v562_v21 }
  0xc2   : > { %v523_v25 = vpop.f32.mrf.mxu0 }
  0xc3   : > { %v643_v28 = vpop.f32.mrf.mxu3 }
  0xc4   : > { %v1847_v29 = vadd.f32 %v643_v28, %v603_v24  ;;  %v564_v30 = vpop.f32.mrf.mxu1 }
  0xc5   : > { %v565_v32 = vadd.f32 %v564_v30, %v523_v25  ;;  %850 = vmatmul.f32.gmra.mxu0 %v230_v26  ;;  %932 = vmatmul.f32.gmra.mxu2 %v232_v27 }
  0xc7   : > { %891 = vmatmul.f32.gmra.mxu1 %v231_v31 }
  0xc8   : > { %1100 = vmatmul.msk.f32.gmra.mxu3 %vm468_vm1, %v233_v33  ;;  %v605_v34 = vpop.f32.mrf.mxu2 }
  0xc9   : > { %v606_v35 = vadd.f32 %v605_v34, %v565_v32 }
  0xca   : > { %v526_v36 = vpop.f32.mrf.mxu0 }
  0xcb   : > { %v646_v39 = vpop.f32.mrf.mxu3 }
  0xcc   : > { %v1854_v40 = vadd.f32 %v646_v39, %v606_v35  ;;  %v567_v41 = vpop.f32.mrf.mxu1 }
  0xcd   : > { %v568_v43 = vadd.f32 %v567_v41, %v526_v36  ;;  %853 = vmatmul.f32.gmra.mxu0 %v242_v37  ;;  %935 = vmatmul.f32.gmra.mxu2 %v244_v38 }
  0xcf   : > { %894 = vmatmul.f32.gmra.mxu1 %v243_v42 }
  0xd0   : > { %1101 = vmatmul.msk.f32.gmra.mxu3 %vm468_vm1, %v245_v44  ;;  %v608_v45 = vpop.f32.mrf.mxu2 }
  0xd1   : > { %v609_v46 = vadd.f32 %v608_v45, %v568_v43 }
  0xd2   : > { %v529_v47 = vpop.f32.mrf.mxu0 }
  0xd3   : > { %v649_v50 = vpop.f32.mrf.mxu3 }
  0xd4   : > { %v1861_v51 = vadd.f32 %v649_v50, %v609_v46  ;;  %v570_v52 = vpop.f32.mrf.mxu1 }
  0xd5   : > { %v571_v54 = vadd.f32 %v570_v52, %v529_v47  ;;  %856 = vmatmul.f32.gmra.mxu0 %v254_v48  ;;  %938 = vmatmul.f32.gmra.mxu2 %v256_v49 }
  0xd7   : > { %897 = vmatmul.f32.gmra.mxu1 %v255_v53 }
  0xd8   : > { %1102 = vmatmul.msk.f32.gmra.mxu3 %vm468_vm1, %v257_v55  ;;  %v611_v56 = vpop.f32.mrf.mxu2 }
  0xd9   : > { %v612_v57 = vadd.f32 %v611_v56, %v571_v54 }
  0xda   : > { %v532_v58 = vpop.f32.mrf.mxu0 }
  0xdb   : > { %v652_v61 = vpop.f32.mrf.mxu3 }
  0xdc   : > { %v1868_v62 = vadd.f32 %v652_v61, %v612_v57  ;;  %v573_v63 = vpop.f32.mrf.mxu1 }
  0xdd   : > { %v574_v1 = vadd.f32 %v573_v63, %v532_v58  ;;  %859 = vmatmul.f32.gmra.mxu0 %v266_v59  ;;  %941 = vmatmul.f32.gmra.mxu2 %v268_v60 }
  0xdf   : > { %900 = vmatmul.f32.gmra.mxu1 %v267_v0 }
  0xe0   : > { %1103 = vmatmul.msk.f32.gmra.mxu3 %vm468_vm1, %v269_v2  ;;  %v614_v3 = vpop.f32.mrf.mxu2 }
  0xe1   : > { %v615_v4 = vadd.f32 %v614_v3, %v574_v1 }
  0xe2   : > { %v535_v5 = vpop.f32.mrf.mxu0 }
  0xe3   : > { %v655_v9 = vpop.f32.mrf.mxu3 }
  0xe4   : > { %v1875_v10 = vadd.f32 %v655_v9, %v615_v4  ;;  %v576_v11 = vpop.f32.mrf.mxu1 }
  0xe5   : > { %v577_v13 = vadd.f32 %v576_v11, %v535_v5  ;;  %862 = vmatmul.f32.gmra.mxu0 %v278_v6  ;;  %944 = vmatmul.f32.gmra.mxu2 %v280_v8 }
  0xe7   : > { %903 = vmatmul.f32.gmra.mxu1 %v279_v12 }
  0xe8   : > { %1104 = vmatmul.msk.f32.gmra.mxu3 %vm468_vm1, %v281_v14  ;;  %v617_v15 = vpop.f32.mrf.mxu2 }
  0xe9   : > { %v618_v16 = vadd.f32 %v617_v15, %v577_v13 }
  0xea   : > { %v678_v17 = vpop.f32.mrf.mxu0 }
  0xeb   : > { %v658_v19 = vpop.f32.mrf.mxu3  ;;  %v679_v48 = vadd.f32 %v678_v17, %v1833_v7 }
  0xec   : > { %v1880_v20 = vadd.f32 %v658_v19, %v618_v16  ;;  %v719_v21 = vpop.f32.mrf.mxu1 }
  0xed   : > { %v720_v52 = vadd.f32 %v719_v21, %v679_v48 }
  0xf0   : > { %v760_v22 = vpop.f32.mrf.mxu2 }
  0xf1   : > { %v761_v55 = vadd.f32 %v760_v22, %v720_v52 }
  0xf2   : > { %v681_v23 = vpop.f32.mrf.mxu0 }
  0xf3   : > { %v801_v24 = vpop.f32.mrf.mxu3  ;;  %v682_v56 = vadd.f32 %v681_v23, %v1840_v18 }
  0xf4   : > { %v722_v25 = vpop.f32.mrf.mxu1  ;;  %v802_v58 = vadd.f32 %v801_v24, %v761_v55 }
  0xf5   : > { %v723_v60 = vadd.f32 %v722_v25, %v682_v56 }
  0xf8   : > { %v763_v26 = vpop.f32.mrf.mxu2 }
  0xf9   : > { %v764_v0 = vadd.f32 %v763_v26, %v723_v60 }
  0xfa   : > { %v684_v27 = vpop.f32.mrf.mxu0 }
  0xfb   : > { %v804_v28 = vpop.f32.mrf.mxu3  ;;  %v685_v1 = vadd.f32 %v684_v27, %v1847_v29 }
  0xfc   : > { %v725_v30 = vpop.f32.mrf.mxu1  ;;  %v805_v4 = vadd.f32 %v804_v28, %v764_v0 }
  0xfd   : > { %v726_v8 = vadd.f32 %v725_v30, %v685_v1 }
 0x100   : > { %v766_v31 = vpop.f32.mrf.mxu2 }
 0x101   : > { %v767_v29 = vadd.f32 %v766_v31, %v726_v8 }
 0x102   : > { %v687_v32 = vpop.f32.mrf.mxu0 }
 0x103   : > { %v807_v33 = vpop.f32.mrf.mxu3  ;;  %v688_v13 = vadd.f32 %v687_v32, %v1854_v40 }
 0x104   : > { %v728_v34 = vpop.f32.mrf.mxu1  ;;  %v808_v16 = vadd.f32 %v807_v33, %v767_v29 }
 0x105   : > { %v729_v21 = vadd.f32 %v728_v34, %v688_v13 }
 0x108   : > { %v769_v35 = vpop.f32.mrf.mxu2 }
 0x109   : > { %v770_v26 = vadd.f32 %v769_v35, %v729_v21 }
 0x10a   : > { %v690_v36 = vpop.f32.mrf.mxu0 }
 0x10b   : > { %v810_v37 = vpop.f32.mrf.mxu3  ;;  %v691_v27 = vadd.f32 %v690_v36, %v1861_v51 }
 0x10c   : > { %v731_v38 = vpop.f32.mrf.mxu1  ;;  %v811_v31 = vadd.f32 %v810_v37, %v770_v26 }
 0x10d   : > { %v732_v48 = vadd.f32 %v731_v38, %v691_v27 }
 0x110   : > { %v1882_v39 = vpop.f32.mrf.mxu2 }
 0x111   : > { %v773_v56 = vadd.f32 %v1882_v39, %v732_v48 }
 0x112   : > { %v1884_v41 = vpop.f32.mrf.mxu0 }
 0x113   : > { %v1886_v42 = vpop.f32.mrf.mxu3  ;;  %v694_v35 = vadd.f32 %v1884_v41, %v1868_v62 }
 0x114   : > { %v1888_v43 = vpop.f32.mrf.mxu1  ;;  %v814_v36 = vadd.f32 %v1886_v42, %v773_v56 }
 0x115   : > { %v735_v38 = vadd.f32 %v1888_v43, %v694_v35 }
 0x118   : > { %v1890_v44 = vpop.f32.mrf.mxu2 }
 0x119   : > { %v776_v39 = vadd.f32 %v1890_v44, %v735_v38 }
 0x11a   : > { %v1892_v45 = vpop.f32.mrf.mxu0 }
 0x11b   : > { %v1894_v46 = vpop.f32.mrf.mxu3  ;;  %v697_v62 = vadd.f32 %v1892_v45, %v1875_v10 }
 0x11c   : > { %v1896_v47 = vpop.f32.mrf.mxu1  ;;  %v817_v42 = vadd.f32 %v1894_v46, %v776_v39 }
 0x11d   : > { %v738_v43 = vadd.f32 %v1896_v47, %v697_v62 }
 0x120   : > { %v1899_v49 = vpop.f32.mrf.mxu2 }
 0x121   : > { %v779_v44 = vadd.f32 %v1899_v49, %v738_v43 }
 0x122   : > { %v1901_v50 = vpop.f32.mrf.mxu0 }
 0x123   : > { %v1903_v53 = vpop.f32.mrf.mxu3  ;;  %v700_v10 = vadd.f32 %v1901_v50, %v1880_v20 }
 0x124   : > { %v1905_v54 = vpop.f32.mrf.mxu1  ;;  %v820_v46 = vadd.f32 %v1903_v53, %v779_v44 }
 0x125   : > { %v741_v47 = vadd.f32 %v1905_v54, %v700_v10 }
 0x128   : > { %v1908_v57 = vpop.f32.mrf.mxu2 }
 0x129   : > { %v782_v49 = vadd.f32 %v1908_v57, %v741_v47 }
 0x12a   : > { %v842_v59 = vpop.f32.mrf.mxu0 }
 0x12b   : > { %v1910_v61 = vpop.f32.mrf.mxu3  ;;  %v843_v7 = vadd.f32 %v842_v59, %v802_v58 }
 0x12c   : > { %v883_v63 = vpop.f32.mrf.mxu1  ;;  %v823_v50 = vadd.f32 %v1910_v61, %v782_v49 }
 0x12d   : > { %v884_v2 = vadd.f32 %v883_v63, %v843_v7 }
 0x130   : > { %v924_v3 = vpop.f32.mrf.mxu2 }
 0x131   : > { %v925_v5 = vadd.f32 %v924_v3, %v884_v2 }
 0x132   : > { %v845_v6 = vpop.f32.mrf.mxu0 }
 0x133   : > { %v846_v18 = vadd.f32 %v845_v6, %v805_v4  ;;  %v965_v9 = vpop.f32.mrf.mxu3 }
 0x134   : > { %v966_v11 = vadd.f32 %v965_v9, %v925_v5  ;;  %v886_v12 = vpop.f32.mrf.mxu1 }
 0x135   : > { %v887_v14 = vadd.f32 %v886_v12, %v846_v18 }
 0x136   : > { %990 = vst.msk [vmem:[%s1917_s19] sm:$0xff] %vm989_vm2, %v966_v11 }
 0x138   : > { %v927_v15 = vpop.f32.mrf.mxu2 }
 0x139   : > { %v928_v17 = vadd.f32 %v927_v15, %v887_v14 }
 0x13a   : > { %v848_v19 = vpop.f32.mrf.mxu0 }
 0x13b   : > { %v849_v22 = vadd.f32 %v848_v19, %v808_v16  ;;  %v968_v23 = vpop.f32.mrf.mxu3 }
 0x13c   : > { %v969_v24 = vadd.f32 %v968_v23, %v928_v17  ;;  %v889_v25 = vpop.f32.mrf.mxu1 }
 0x13d   : > { %v890_v28 = vadd.f32 %v889_v25, %v849_v22 }
 0x13e   : > { %991 = vst.msk [vmem:[%s1917_s19 + $0x8] sm:$0xff] %vm989_vm2, %v969_v24 }
 0x140   : > { %v930_v30 = vpop.f32.mrf.mxu2 }
 0x141   : > { %v931_v40 = vadd.f32 %v930_v30, %v890_v28 }
 0x142   : > { %v851_v32 = vpop.f32.mrf.mxu0 }
 0x143   : > { %v852_v33 = vadd.f32 %v851_v32, %v811_v31  ;;  %v971_v52 = vpop.f32.mrf.mxu3 }
 0x144   : > { %v972_v55 = vadd.f32 %v971_v52, %v931_v40  ;;  %v892_v34 = vpop.f32.mrf.mxu1 }
 0x145   : > { %v893_v58 = vadd.f32 %v892_v34, %v852_v33 }
 0x146   : > { %992 = vst.msk [vmem:[%s1917_s19 + $0x10] sm:$0xff] %vm989_vm2, %v972_v55 }
 0x148   : > { %v933_v51 = vpop.f32.mrf.mxu2 }
 0x149   : > { %v934_v37 = vadd.f32 %v933_v51, %v893_v58 }
 0x14a   : > { %v854_v59 = vpop.f32.mrf.mxu0 }
 0x14b   : > { %v855_v60 = vadd.f32 %v854_v59, %v814_v36  ;;  %v974_v7 = vpop.f32.mrf.mxu3 }
 0x14c   : > { %v975_v63 = vadd.f32 %v974_v7, %v934_v37  ;;  %v895_v0 = vpop.f32.mrf.mxu1 }
 0x14d   : > { %v896_v41 = vadd.f32 %v895_v0, %v855_v60 }
 0x14e   : > { %993 = vst.msk [vmem:[%s1917_s19 + $0x18] sm:$0xff] %vm989_vm2, %v975_v63 }
 0x150   : > { %v936_v1 = vpop.f32.mrf.mxu2 }
 0x151   : > { %v937_v2 = vadd.f32 %v936_v1, %v896_v41 }
 0x152   : > { %v857_v3 = vpop.f32.mrf.mxu0 }
 0x153   : > { %v858_v4 = vadd.f32 %v857_v3, %v817_v42  ;;  %v977_v5 = vpop.f32.mrf.mxu3 }
 0x154   : > { %v978_v6 = vadd.f32 %v977_v5, %v937_v2  ;;  %v898_v8 = vpop.f32.mrf.mxu1 }
 0x155   : > { %v899_v45 = vadd.f32 %v898_v8, %v858_v4 }
 0x156   : > { %994 = vst.msk [vmem:[%s1917_s19 + $0x20] sm:$0xff] %vm989_vm2, %v978_v6 }
 0x158   : > { %v939_v18 = vpop.f32.mrf.mxu2 }
 0x159   : > { %v940_v9 = vadd.f32 %v939_v18, %v899_v45 }
 0x15a   : > { %v860_v11 = vpop.f32.mrf.mxu0 }
 0x15b   : > { %v861_v12 = vadd.f32 %v860_v11, %v820_v46  ;;  %v980_v29 = vpop.f32.mrf.mxu3 }
 0x15c   : > { %v981_v13 = vadd.f32 %v980_v29, %v940_v9  ;;  %v901_v14 = vpop.f32.mrf.mxu1 }
 0x15d   : > { %v902_v15 = vadd.f32 %v901_v14, %v861_v12 }
 0x15e   : > { %995 = vst.msk [vmem:[%s1917_s19 + $0x28] sm:$0xff] %vm989_vm2, %v981_v13 }
 0x160   : > { %v942_v20 = vpop.f32.mrf.mxu2 }
 0x161   : > { %v943_v16 = vadd.f32 %v942_v20, %v902_v15 }
 0x162   : > { %v863_v53 = vpop.f32.mrf.mxu0 }
 0x163   : > { %v864_v17 = vadd.f32 %v863_v53, %v823_v50  ;;  %v983_v19 = vpop.f32.mrf.mxu3 }
 0x164   : > { %v984_v21 = vadd.f32 %v983_v19, %v943_v16  ;;  %v904_v54 = vpop.f32.mrf.mxu1 }
 0x165   : > { %v905_v22 = vadd.f32 %v904_v54, %v864_v17 }
 0x166   : > { %996 = vst.msk [vmem:[%s1917_s19 + $0x30] sm:$0xff] %vm989_vm2, %v984_v21 }
 0x168   : > { %v945_v23 = vpop.f32.mrf.mxu2 }
 0x169   : > { %v946_v24 = vadd.f32 %v945_v23, %v905_v22 }
 0x16b   : > { %v986_v25 = vpop.f32.mrf.mxu3 }
 0x16c   : > { %v987_v57 = vadd.f32 %v986_v25, %v946_v24 }
 0x16e   : > { %997 = vst.msk [vmem:[%s1917_s19 + $0x38] sm:$0xff] %vm989_vm2, %v987_v57 }
 0x16f PF: > { %s12_s11 = sadd.s32 1, %s1155_s11   ;;  %s1966_s9 = smov %s1151_s10 }
 0x170   : > { %p9_p5 = scmp.ge.s32.totalorder %s12_s11, 4   ;;  %s1967_s10 = smov %s1969_s12 }
 0x172   :  { %11 = sbr.rel (!%p9_p5) target bundleno = 2 (0x2), region = 58 }

</bundles_post_ra>
